<compile_context>
chip_gen: v7x
topology: tpu7x:2x2x1
jax: 0.10.0
libtpu: 0.0.40
codegen_flags: <defaults>
</compile_context>

<pallas_src>
import functools
import math

import jax
import jax.numpy as jnp
import numpy as np
from jax.experimental import pallas as pl
from jax.experimental.pallas import tpu as pltpu


def _pe_kernel(inv_freq_ref, col_pos_ref, odd_ref, o_ref, *, pack: int):
    """Write one (row_tile, pack*d_model) tile of the packed PE slab.

    Slab element (sr, c) corresponds to table element
      position = sr * pack + col_pos[c],  column = c % d_model,
    and all per-column quantities arrive precomputed as (1, width) inputs.
    """
    tm, _ = o_ref.shape
    row0 = pl.program_id(0) * tm  # absolute slab-row offset of this tile

    # Base table position of each slab row (exact small integers in f32;
    # exactness assumes positions < 2**24, i.e. any realistic max_len).
    base = ((row0 + jax.lax.broadcasted_iota(jnp.int32, (tm, 1), 0)) * pack
            ).astype(jnp.float32)                       # (tm, 1)

    pos = base + col_pos_ref[...]                       # (tm, width)
    angle = pos * inv_freq_ref[...]                     # (tm, width)
    # Explicit cos for odd columns (accurate at large angles, unlike the
    # sin(x + pi/2) trick).  Table build is one-time & cached, so the extra
    # transcendental is acceptable.
    val = jnp.where(odd_ref[...] > 0.5, jnp.cos(angle), jnp.sin(angle))
    o_ref[...] = val.astype(o_ref.dtype)


def _num_tensorcores() -> int:
    """Best-effort TensorCore-per-device count (v7x: 2).  Defaults to 1."""
    try:
        dev = jax.devices()[0]
        for attr in ("num_cores", "core_count"):
            n = getattr(dev, attr, None)
            if isinstance(n, int) and n > 0:
                return n
        kind = str(getattr(dev, "device_kind", "")).lower()
        if "v7" in kind:
            return 2
    except Exception:
        pass
    return 1


def _vmem_budget_bytes():
    """(double-buffered-output budget, physical VMEM capacity) in bytes."""
    cap = 128 * 2**20
    try:
        cap = int(pltpu.get_tpu_info().vmem_capacity_bytes)
    except Exception:
        pass
    # ~1/4 of physical VMEM for the double-buffered output:
    # v5e/v6e (128 MiB) -> 32 MiB, v7x (64 MiB) -> 16 MiB.  Ample headroom.
    return max(4 * 2**20, cap // 4), cap


def _choose_row_tile(rows_aligned: int, width: int, elem_bytes: int,
                     vmem_budget: int, num_tc: int, align: int) -> int:
    """Row tile (multiple of `align`) whose double-buffered output fits the
    budget; step count is kept a multiple of the TensorCore count and, when
    possible, chosen so the tile divides the row extent exactly."""
    bytes_per_row = width * elem_bytes
    max_tile = (vmem_budget // (2 * bytes_per_row)) // align * align
    max_tile = int(max(align, min(max_tile, 4096)))

    units = rows_aligned // align
    n_steps = pl.cdiv(rows_aligned, max_tile)
    if num_tc > 1 and units >= num_tc:
        # Keep every TensorCore busy (v7x shards the "parallel" axis across 2).
        n_steps = max(n_steps, num_tc)
        n_steps = pl.cdiv(n_steps, num_tc) * num_tc
    n_steps = max(1, min(n_steps, units))

    # Prefer a step count whose tile evenly divides the row extent: no padded
    # straggler tile and no trailing trim copy in the wrapper.
    for n in range(n_steps, min(units, n_steps + 64) + 1):
        if units % n == 0 and (num_tc <= 1 or n % num_tc == 0 or n == 1):
            n_steps = n
            break

    return pl.cdiv(units, n_steps) * align


@functools.lru_cache(maxsize=None)
def build_encoding_table(max_len: int, d_model: int,
                         dtype=jnp.float32) -> jax.Array:
    """Build the (max_len, d_model) positional-encoding table with Pallas."""
    # ---- lane-dense packing: F table rows per slab row so the last dim is a
    # multiple of 128 (full-lane stores instead of masked vst.msk). ----
    if d_model % 128 != 0:
        pack = math.lcm(d_model, 128) // d_model
        # Cap so awkward d_model (e.g. odd) doesn't blow up the slab row, and
        # never pack beyond the table itself.
        if pack * d_model > 4096 or pack > max(1, max_len):
            pack = 1
    else:
        pack = 1
    width = pack * d_model

    # ---- per-column constants, computed on host in float64 (hoisted out of
    # the kernel entirely). ----
    cols = np.arange(width, dtype=np.int64)
    j = cols % d_model                               # column within d_model
    two_i = (j // 2) * 2
    inv_freq = np.power(10000.0, -two_i.astype(np.float64) / float(d_model))
    inv_freq = jnp.asarray(inv_freq.reshape(1, width).astype(np.float32))
    col_pos = jnp.asarray((cols // d_model).reshape(1, width).astype(np.float32))
    odd = jnp.asarray((j % 2).reshape(1, width).astype(np.float32))

    # ---- tiling ----
    elem_bytes = jnp.dtype(dtype).itemsize
    align = max(8, 32 // elem_bytes)                 # f32: 8, bf16: 16, 8-bit: 32
    rows = pl.cdiv(max_len, pack)                    # slab rows needed
    rows_aligned = pl.cdiv(rows, align) * align

    num_tc = _num_tensorcores()
    budget, vmem_cap = _vmem_budget_bytes()
    row_tile = _choose_row_tile(rows_aligned, width, elem_bytes,
                                budget, num_tc, align)
    padded_rows = pl.cdiv(rows_aligned, row_tile) * row_tile
    grid = (padded_rows // row_tile,)

    out_buf = 2 * row_tile * width * elem_bytes      # double-buffered output
    in_buf = 2 * 3 * width * 4                       # tiny (1, width) inputs
    vmem_limit = int(min(vmem_cap * 3 // 4,
                         max(out_buf + in_buf + (4 << 20), 16 << 20)))

    slab = pl.pallas_call(
        functools.partial(_pe_kernel, pack=pack),
        out_shape=jax.ShapeDtypeStruct((padded_rows, width), dtype),
        grid=grid,
        in_specs=[pl.BlockSpec((1, width), lambda i: (0, 0))] * 3,
        out_specs=pl.BlockSpec((row_tile, width), lambda i: (i, 0)),
        compiler_params=pltpu.CompilerParams(
            dimension_semantics=("parallel",),
            vmem_limit_bytes=vmem_limit),
    )(inv_freq, col_pos, odd)

    # Row-major reshape back to (padded_rows*pack, d_model) is free.
    table = slab.reshape(padded_rows * pack, d_model)
    if padded_rows * pack > max_len:
        # One-time trim of alignment padding only (tile prefers exact division).
        table = table[:max_len]
    return table


class PositionalEncoding:
    """JAX/Pallas equivalent of the PyTorch PositionalEncoding module."""

    def __init__(self, d_model: int, max_len: int, dtype=jnp.float32):
        self.d_model = d_model
        self.max_len = max_len
        # Fixed (non-trainable) buffer, computed once by the kernel and cached.
        # NOTE: pass dtype=jnp.bfloat16 if the consumer adds it to bf16
        # activations (halves the recurring HBM read stream each forward).
        self.encoding = build_encoding_table(max_len, d_model, dtype)

    def __call__(self, x: jax.Array) -> jax.Array:
        # x: (batch_size, seq_len); only the shape is used (matches PyTorch).
        batch_size, seq_len = x.shape
        # TODO(synk): for steady-state perf, fuse this slice + the subsequent
        # add into the consumer's kernel instead of materializing a slice here.
        return self.encoding[:seq_len, :]


def _reference_encoding(max_len: int, d_model: int) -> np.ndarray:
    """Float64 reference of the mathematical formula."""
    pos = np.arange(max_len, dtype=np.float64)[:, None]
    two_i = np.arange(0, d_model, 2, dtype=np.float64)
    denom = np.power(10000.0, two_i / d_model)
    enc = np.zeros((max_len, d_model), dtype=np.float64)
    enc[:, 0::2] = np.sin(pos / denom)
    enc[:, 1::2] = np.cos(pos / denom)
    return enc


if __name__ == "__main__":
    d_model = 32
    max_len = 64
    batch, seq_len = 2, 8

    # f32 kernel vs f64 reference: the angle pos*inv_freq is formed in f32, so
    # results may deviate by ~|angle| * 2**-23 (+ sin/cos impl error), i.e.
    # <~1.5e-5 for max_len <= 128.  1e-4 leaves comfortable margin.
    TOL = dict(rtol=1e-4, atol=1e-4)

    key = jax.random.PRNGKey(0)
    # Input values are irrelevant; only the (batch, seq_len) shape is consumed.
    x = jax.random.randint(key, (batch, seq_len), 0, 100, dtype=jnp.int32)

    module = PositionalEncoding(d_model=d_model, max_len=max_len)
    out = jax.block_until_ready(module(x))

    assert out.shape == (seq_len, d_model)
    ref_full = _reference_encoding(max_len, d_model)
    np.testing.assert_allclose(np.asarray(module.encoding, dtype=np.float64),
                               ref_full, **TOL)
    np.testing.assert_allclose(np.asarray(out, dtype=np.float64),
                               ref_full[:seq_len, :], **TOL)

    # Unpacked path (d_model % 128 == 0).
    tbl2 = jax.block_until_ready(build_encoding_table(128, 256))
    np.testing.assert_allclose(np.asarray(tbl2, dtype=np.float64),
                               _reference_encoding(128, 256), **TOL)

    # Generalized lane-dense packing for a d_model that does not divide 128.
    tbl3 = jax.block_until_ready(build_encoding_table(40, 96))
    np.testing.assert_allclose(np.asarray(tbl3, dtype=np.float64),
                               _reference_encoding(40, 96), **TOL)

    print("KERNEL_OK")
</pallas_src>

<mosaic_0001>
module attributes {stable_mosaic.version = 11 : i64} {
  func.func @_pe_kernel(%arg0: i32, %arg1: memref<1x128xf32, #tpu.memory_space<vmem>>, %arg2: memref<1x128xf32, #tpu.memory_space<vmem>>, %arg3: memref<1x128xf32, #tpu.memory_space<vmem>>, %arg4: memref<16x128xf32, #tpu.memory_space<vmem>>) attributes {dimension_semantics = [#tpu.dimension_semantics<parallel>], iteration_bounds = array<i64: 1>, scalar_prefetch = 0 : i64, scratch_operands = 0 : i64, tpu.core_type = #tpu.core_type<tc>, window_params = [{pipeline_mode = #tpu.pipeline_mode<synchronous>, transform_indices = @transform_0, window_bounds = array<i64: 1, 128>}, {pipeline_mode = #tpu.pipeline_mode<synchronous>, transform_indices = @transform_1, window_bounds = array<i64: 1, 128>}, {pipeline_mode = #tpu.pipeline_mode<synchronous>, transform_indices = @transform_2, window_bounds = array<i64: 1, 128>}, {transform_indices = @transform_3, window_bounds = array<i64: 16, 128>}]} {
    %c16_i32 = arith.constant 16 : i32
    %0 = arith.muli %arg0, %c16_i32 : i32
    %1 = tpu.iota {dimensions = array<i32: 0>} : vector<16x1xi32>
    %2 = vector.broadcast %0 : i32 to vector<16x1xi32>
    %3 = arith.addi %2, %1 : vector<16x1xi32>
    %c4_i32 = arith.constant 4 : i32
    %4 = vector.broadcast %c4_i32 : i32 to vector<16x1xi32>
    %5 = arith.muli %3, %4 : vector<16x1xi32>
    %6 = arith.sitofp %5 : vector<16x1xi32> to vector<16x1xf32>
    %c0 = arith.constant 0 : index
    %c0_0 = arith.constant 0 : index
    %7 = vector.load %arg2[%c0, %c0_0] : memref<1x128xf32, #tpu.memory_space<vmem>>, vector<1x128xf32>
    %8 = vector.broadcast %6 : vector<16x1xf32> to vector<16x128xf32>
    %9 = vector.broadcast %7 : vector<1x128xf32> to vector<16x128xf32>
    %10 = arith.addf %8, %9 : vector<16x128xf32>
    %c0_1 = arith.constant 0 : index
    %c0_2 = arith.constant 0 : index
    %11 = vector.load %arg1[%c0_1, %c0_2] : memref<1x128xf32, #tpu.memory_space<vmem>>, vector<1x128xf32>
    %12 = vector.broadcast %11 : vector<1x128xf32> to vector<16x128xf32>
    %13 = arith.mulf %10, %12 : vector<16x128xf32>
    %c0_3 = arith.constant 0 : index
    %c0_4 = arith.constant 0 : index
    %14 = vector.load %arg3[%c0_3, %c0_4] : memref<1x128xf32, #tpu.memory_space<vmem>>, vector<1x128xf32>
    %cst = arith.constant 5.000000e-01 : f32
    %15 = vector.broadcast %cst : f32 to vector<1x128xf32>
    %16 = arith.cmpf ogt, %14, %15 : vector<1x128xf32>
    %17 = math.cos %13 : vector<16x128xf32>
    %18 = math.sin %13 : vector<16x128xf32>
    %19 = vector.shape_cast %16 : vector<1x128xi1> to vector<1x128xi1>
    %20 = vector.broadcast %19 : vector<1x128xi1> to vector<16x128xi1>
    %21 = arith.select %20, %17, %18 : vector<16x128xi1>, vector<16x128xf32>
    %c0_5 = arith.constant 0 : index
    %c0_6 = arith.constant 0 : index
    %22 = vector.load %arg4[%c0_5, %c0_6] : memref<16x128xf32, #tpu.memory_space<vmem>>, vector<16x128xf32>
    tpu.vector_store %arg4[%c0_5, %c0_6], %21 {strides = array<i32>} : memref<16x128xf32, #tpu.memory_space<vmem>>, vector<16x128xf32>,
    return
  }
  func.func @transform_0(%arg0: i32) -> (i32, i32) {
    %c0_i32 = arith.constant 0 : i32
    %c0_i32_0 = arith.constant 0 : i32
    %c0_i32_1 = arith.constant 0 : i32
    return %c0_i32, %c0_i32_0 : i32, i32
  }
  func.func @transform_1(%arg0: i32) -> (i32, i32) {
    %c0_i32 = arith.constant 0 : i32
    %c0_i32_0 = arith.constant 0 : i32
    %c0_i32_1 = arith.constant 0 : i32
    return %c0_i32, %c0_i32_0 : i32, i32
  }
  func.func @transform_2(%arg0: i32) -> (i32, i32) {
    %c0_i32 = arith.constant 0 : i32
    %c0_i32_0 = arith.constant 0 : i32
    %c0_i32_1 = arith.constant 0 : i32
    return %c0_i32, %c0_i32_0 : i32, i32
  }
  func.func @transform_3(%arg0: i32) -> (i32, i32) {
    %c0_i32 = arith.constant 0 : i32
    %c0_i32_0 = arith.constant 0 : i32
    return %arg0, %c0_i32 : i32, i32
  }
}

</mosaic_0001>

<bundles_post_ra>
// kernel: tpu_custom_call.1
= control target key start
LH: loop header
LB: loop body
LE: loop exit
PB: predicated region body
PF: predicated region fallthrough
CT: control target
= control target key end

     0   :  { %8 = vsyncpa [#allocation3], 0  ;;  %s728_s0 = inlined_call_operand.hbm [shape: f32[1,128], index: 0, kind: input, shape index: {}]   ;;  %s729_s1 = inlined_call_operand.vmem [shape: f32[1,128], index: 1, kind: input, shape index: {}]   ;;  %s730_s2 = inlined_call_operand.vmem [shape: f32[1,128], index: 2, kind: input, shape index: {}]   ;;  %s731_s3 = inlined_call_operand.hbm [shape: f32[16,128], index: 3, kind: output, shape index: {}]  }
   0x1   :  { %9 = vsyncpa [#allocation4], 0  ;;  %s592_s12 = smov [#allocation2]   ;;  %s544_s16 = scalar_lea.hbm %s728_s0, 16 }
   0x2   :  { %s16_s13 = sshll.u32 %s592_s12, 4  ;;  %p545_p0 = scmp.ne.s32.totalorder %s728_s0, %s544_s16  ;;  %s17_s13 = int_to_ptr.vmem [resolvable:$true] %s16_s13 }
   0x3   :  { %p548_p1 = scmp.lt.u32.totalorder %s544_s16, %s728_s0 }
   0x5   :  { %p550_p2 = pnand %p548_p1, %p545_p0 }
   0x7   :  { %553 = shalt.err (!%p550_p2)
}
   0x8   :  { %s554_s21 = scalar_lea.vmem %s17_s13, 16  ;;  %s558_s22 = scalar_lea.vmem %s17_s13, 32 }
   0x9   :  { %p555_p3 = scmp.ne.s32.totalorder %s17_s13, %s554_s21  ;;  %p559_p4 = scmp.lt.s32.totalorder %s17_s13, %s17_s13 }
   0xa   :  { %p560_p5 = scmp.lt.s32.totalorder %s558_s22, %s554_s21 }
   0xc   :  { %p561_p6 = por %p560_p5, %p559_p4 }
   0xe   :  { %p562_p7 = pnand %p561_p6, %p555_p3 }
  0x10   :  { %565 = shalt.err (!%p562_p7)
}
  0x11   :  { %19 = dma.hbm_to_vmem [thread:$0]  %s728_s0, 16, %s17_s13, [#allocation3]  }
  0x12   :  { %588 = dma.done.wait [#allocation3], 16  }
  0x13   :  { %589 = vsyncadd [#allocation3], 4294967280  ;;  %v28_v0 = vlaneseq  ;;  %v499_v6 = vld [vmem:[%s729_s1] ss:$0 sm:$0xff]  ;;  %v593_v32 = vmov 683565275  }
  0x14   :  { %v500_v7 = vld [vmem:[#allocation2] ss:$0 sm:$0xff]  ;;  %v594_v34 = vmov 2475754826   ;;  %v595_v36 = vmov 2131351028  }
  0x15   :  { %v635_v1 = vshrl.u32 %v28_v0, 7  ;;  %v596_v38 = vmov 2102212464   ;;  %v597_v40 = vmov 920167782  }
  0x16   :  { %v598_v47 = vmov 1326507024  }
  0x17   :  { %v30_v2 = vadd.s32 8, %v635_v1  ;;  %v34_v3 = vmul.u32 4, %v635_v1 }
  0x19   :  { %v35_v4 = vmul.u32 4, %v30_v2  ;;  %v36_v5 = vcvt.s32.f32 %v34_v3 }
  0x1b   :  { %v37_v8 = vcvt.s32.f32 %v35_v4  ;;  %v45_v9 = vadd.f32 %v499_v6, %v36_v5 }
  0x1d   :  { %v46_v10 = vadd.f32 %v499_v6, %v37_v8  ;;  %v642_v11 = vmul.f32 %v500_v7, %v45_v9 }
  0x1f   :  { %v58_v12 = vand.u32 2147483647, %v642_v11  ;;  %v61_v13 = vand.u32 2139095040, %v642_v11  ;;  %v646_v14 = vmul.f32 %v500_v7, %v46_v10  ;;  %vm60_vm14 = vcmp.lt.s32.totalorder %v642_v11, 0 }
  0x21   :  { %v62_v15 = vshrl.u32 %v61_v13, 23  ;;  %v65_v16 = vand.u32 8388607, %v58_v12  ;;  %v161_v17 = vand.u32 2147483647, %v646_v14  ;;  %v164_v18 = vand.u32 2139095040, %v646_v14 }
  0x22   :  { %vm59_vm15 = vcmp.le.f32.partialorder %v58_v12, 0.7853982 }
  0x23   :  { %v501_v19 = vadd.s32 4294967169, %v62_v15  ;;  %v165_v20 = vshrl.u32 %v164_v18, 23  ;;  %v66_v22 = vor.u32 8388608, %v65_v16  ;;  %v654_v24 = vand.u32 8388607, %v161_v17 }
  0x25   :  { %v68_v21 = vadd.s32 1, %v501_v19  ;;  %v505_v23 = vadd.s32 4294967169, %v165_v20  ;;  %v656_v29 = vshll.u32 %v66_v22, 8  ;;  %v169_v30 = vor.u32 8388608, %v654_v24 }
  0x27   :  { %vm69_vm0 = vcmp.gt.s32.totalorder %v68_v21, 0  ;;  %v171_v26 = vadd.s32 1, %v505_v23 }
  0x28   :  { %v70_v25 = vsel %vm69_vm0, %v68_v21, 0 }
  0x29   :  { %v71_v27 = vshrl.u32 %v70_v25, 5  ;;  %v72_v28 = vand.u32 31, %v70_v25  ;;  %vm172_vm1 = vcmp.gt.s32.totalorder %v171_v26, 0 }
  0x2a   :  { %v173_v52 = vsel %vm172_vm1, %v171_v26, 0  ;;  %vm163_vm1 = vcmp.lt.s32.totalorder %v646_v14, 0 }
  0x2b   :  { %v73_v31 = vsub.s32 32, %v72_v28  ;;  %v75_v33 = vshll.u32 %v593_v32, %v72_v28  ;;  %v78_v35 = vshll.u32 %v594_v34, %v72_v28  ;;  %v81_v37 = vshll.u32 %v595_v36, %v72_v28 }
  0x2c   :  { %v84_v39 = vshll.u32 %v596_v38, %v72_v28  ;;  %v87_v41 = vshll.u32 %v597_v40, %v72_v28  ;;  %vm90_vm2 = vcmp.lt.s32.totalorder %v71_v27, 1  ;;  %vm91_vm3 = vcmp.lt.s32.totalorder %v71_v27, 2 }
  0x2d   :  { %v74_v42 = vshrl.u32 %v593_v32, %v73_v31  ;;  %v76_v43 = vshrl.u32 %v594_v34, %v73_v31  ;;  %v79_v44 = vshrl.u32 %v595_v36, %v73_v31  ;;  %v82_v45 = vshrl.u32 %v596_v38, %v73_v31 }
  0x2e   :  { %v85_v46 = vshrl.u32 %v597_v40, %v73_v31  ;;  %v88_v48 = vshrl.u32 %v598_v47, %v73_v31  ;;  %vm92_vm4 = vcmp.lt.s32.totalorder %v71_v27, 3  ;;  %vm93_vm5 = vcmp.lt.s32.totalorder %v71_v27, 4 }
  0x2f   :  { %v77_v49 = vor.u32 %v76_v43, %v75_v33  ;;  %v80_v50 = vor.u32 %v79_v44, %v78_v35  ;;  %v83_v51 = vor.u32 %v82_v45, %v81_v37  ;;  %v174_v55 = vshrl.u32 %v173_v52, 5 }
  0x30   :  { %v86_v53 = vor.u32 %v85_v46, %v84_v39  ;;  %v89_v54 = vor.u32 %v88_v48, %v87_v41  ;;  %v175_v56 = vand.u32 31, %v173_v52 }
  0x31   :  { %v94_v57 = vsel %vm90_vm2, %v74_v42, %v77_v49  ;;  %v95_v58 = vsel %vm93_vm5, %v83_v51, 2102212464  ;;  %v98_v59 = vsel %vm90_vm2, %v77_v49, %v80_v50  ;;  %v102_v60 = vsel %vm90_vm2, %v80_v50, %v83_v51 }
  0x32   :  { %v96_v61 = vsel %vm92_vm4, %v80_v50, %v95_v58  ;;  %v99_v62 = vsel %vm93_vm5, %v86_v53, 920167782  ;;  %v103_v63 = vsel %vm93_vm5, %v89_v54, 1326507024  ;;  %v176_v0 = vsub.s32 32, %v175_v56 }
  0x33   :  { %v97_v2 = vsel %vm91_vm3, %v94_v57, %v96_v61  ;;  %v100_v3 = vsel %vm92_vm4, %v83_v51, %v99_v62  ;;  %v104_v4 = vsel %vm92_vm4, %v86_v53, %v103_v63  ;;  %v178_v5 = vshll.u32 %v593_v32, %v175_v56 }
  0x34   :  { %v101_v6 = vsel %vm91_vm3, %v98_v59, %v100_v3  ;;  %v105_v7 = vsel %vm91_vm3, %v102_v60, %v104_v4  ;;  %v113_v8 = vmul.u32 %v656_v29, %v97_v2  ;;  %v177_v9 = vshrl.u32 %v593_v32, %v176_v0 }
  0x35   :  { %v671_v10 = vmul.u32.u64.low %v656_v29, %v105_v7  ;;  %v672_v13 = vmul.u32.u64.high %v656_v29, %v105_v7, %v671_v10  ;;  %v675_v15 = vmul.u32.u64.low %v656_v29, %v101_v6  ;;  %v676_v16 = vmul.u32.u64.high %v656_v29, %v101_v6, %v675_v15 }
  0x36   :  { %v179_v18 = vshrl.u32 %v594_v34, %v176_v0  ;;  %v181_v19 = vshll.u32 %v594_v34, %v175_v56  ;;  %v182_v20 = vshrl.u32 %v595_v36, %v176_v0  ;;  %v184_v21 = vshll.u32 %v595_v36, %v175_v56 }
  0x37   :  { %v185_v22 = vshrl.u32 %v596_v38, %v176_v0  ;;  %v187_v23 = vshll.u32 %v596_v38, %v175_v56  ;;  %v188_v25 = vshrl.u32 %v597_v40, %v176_v0  ;;  %v190_v26 = vshll.u32 %v597_v40, %v175_v56 }
  0x38   :  { %v180_v27 = vor.u32 %v179_v18, %v178_v5  ;;  %v183_v28 = vor.u32 %v182_v20, %v181_v19  ;;  %v191_v31 = vshrl.u32 %v598_v47, %v176_v0  ;;  %vm193_vm6 = vcmp.lt.s32.totalorder %v174_v55, 1 }
  0x39   :  { %vm115_vm7 = vc.u32 %v672_v13, %v675_v15  ;;  %v116_v32 = vadd.s32 1, %v676_v16  ;;  %v186_v33 = vor.u32 %v185_v22, %v184_v21  ;;  %v209_v29 = vshll.u32 %v169_v30, 8 }
  0x3a   :  { %v189_v35 = vor.u32 %v188_v25, %v187_v23  ;;  %v192_v34 = vor.u32 %v191_v31, %v190_v26  ;;  %vm194_vm8 = vcmp.lt.s32.totalorder %v174_v55, 2  ;;  %vm195_vm9 = vcmp.lt.s32.totalorder %v174_v55, 3 }
  0x3b   :  { %v117_v36 = vsel %vm115_vm7, %v116_v32, %v676_v16  ;;  %vm196_vm10 = vcmp.lt.s32.totalorder %v174_v55, 4  ;;  %v197_v37 = vsel %vm193_vm6, %v177_v9, %v180_v27  ;;  %v201_v38 = vsel %vm193_vm6, %v180_v27, %v183_v28 }
  0x3c   :  { %v118_v39 = vadd.s32 %v117_v36, %v113_v8  ;;  %v198_v40 = vsel %vm196_vm10, %v186_v33, 2102212464  ;;  %v202_v41 = vsel %vm196_vm10, %v189_v35, 920167782  ;;  %v205_v42 = vsel %vm193_vm6, %v183_v28, %v186_v33 }
  0x3d   :  { %v199_v43 = vsel %vm195_vm9, %v183_v28, %v198_v40  ;;  %v203_v44 = vsel %vm195_vm9, %v186_v33, %v202_v41  ;;  %v206_v24 = vsel %vm196_vm10, %v192_v34, 1326507024  ;;  %v114_v4 = vadd.s32 %v675_v15, %v672_v13 }
  0x3e   :  { %v119_v30 = vadd.s32 536870912, %v118_v39  ;;  %v204_v45 = vsel %vm194_vm8, %v201_v38, %v203_v44  ;;  %v207_v46 = vsel %vm195_vm9, %v189_v35, %v206_v24  ;;  %v200_v47 = vsel %vm194_vm8, %v197_v37, %v199_v43  ;;  %v56_v43 = vld [vmem:[%s730_s2] sm:$0x1]  ;;  %s600_s2 = smov [#allocation5]  }
  0x3f   :  { %v208_v48 = vsel %vm194_vm8, %v205_v42, %v207_v46  ;;  %v689_v49 = vmul.u32.u64.low %v209_v29, %v204_v45  ;;  %v690_v50 = vmul.u32.u64.high %v209_v29, %v204_v45, %v689_v49  ;;  %v216_v56 = vmul.u32 %v209_v29, %v200_v47  ;;  %s487_s27 = sshll.u32 %s600_s2, 4  ;;  %s488_s27 = int_to_ptr.vmem [resolvable:$true] %s487_s27 }
  0x40   :  { %v120_v51 = vshrl.u32 %v119_v30, 30  ;;  %v692_v52 = vmul.u32.u64.low %v209_v29, %v208_v48  ;;  %v693_v53 = vmul.u32.u64.high %v209_v29, %v208_v48, %v692_v52  ;;  %vm57_vm0 = vcmp.gt.f32.partialorder %v56_v43, 0.5  ;;  %s566_s28 = scalar_lea.vmem %s488_s27, 256  ;;  %p571_p9 = scmp.lt.s32.totalorder %s488_s27, %s488_s27 }
  0x41   :  { %v219_v57 = vadd.s32 1, %v690_v50  ;;  %v475_v46 = vsub.s32 0, %v635_v1  ;;  %vm162_vm2 = vcmp.le.f32.partialorder %v161_v17, 0.7853982  ;;  %vm150_vm9 = vweird.f32 %v642_v11  ;;  %p567_p8 = scmp.ne.s32.totalorder %s488_s27, %s566_s28  ;;  %p572_p10 = scmp.lt.s32.totalorder %s566_s28, %s566_s28 }
  0x42   :  { %v121_v54 = vshll.u32 %v120_v51, 30  ;;  %vm218_vm11 = vc.u32 %v693_v53, %v689_v49  ;;  %v144_v28 = vsub.s32 4, %v120_v51  ;;  %v217_v13 = vadd.s32 %v689_v49, %v693_v53 }
  0x43   :  { %v220_v59 = vsel %vm218_vm11, %v219_v57, %v690_v50  ;;  %v599_v50 = vmov 0   ;;  %p573_p11 = por %p572_p10, %p571_p9 }
  0x44   :  { %v122_v58 = vsub.s32 %v118_v39, %v121_v54  ;;  %v221_v61 = vadd.s32 %v220_v59, %v216_v56  ;;  %v145_v34 = vsel %vm60_vm14, %v144_v28, %v120_v51  ;;  %v472_v51 = vsel %vm57_vm0, 1, %v599_v50 }
  0x45   :  { %v147_v40 = vsel %vm59_vm15, 0, %v145_v34  ;;  %v476_v54 = vrot.slane %v472_v51, %v475_v46  ;;  %p574_p12 = pnand %p573_p11, %p567_p8 }
  0x46   :  { %v124_v60 = vsub.s32 0, %v122_v58  ;;  %v222_v62 = vadd.s32 536870912, %v221_v61  ;;  %v357_v30 = vadd.s32 3, %v147_v40  ;;  %v151_v48 = vand.u32 3, %v147_v40 }
  0x47   :  { %vm477_vm10 = vcmp.eq.s32.totalorder %v476_v54, 1 }
  0x48   :  { %v502_v55 = vmin.u32 %v124_v60, %v122_v58  ;;  %v223_v0 = vshrl.u32 %v222_v62, 30  ;;  %v358_v49 = vand.u32 3, %v357_v30  ;;  %vm156_vm3 = vcmp.eq.s32.totalorder %v151_v48, 2 }
  0x49   :  { %vm153_vm5 = vcmp.eq.s32.totalorder %v151_v48, 0  ;;  %vm152_vm7 = vcmp.lt.s32.totalorder %v151_v48, 2 }
  0x4a   :  { %v126_v63 = vclz %v502_v55  ;;  %v224_v3 = vshll.u32 %v223_v0, 30  ;;  %v247_v45 = vsub.s32 4, %v223_v0  ;;  %vm363_vm4 = vcmp.eq.s32.totalorder %v358_v49, 2 }
  0x4b   :  { %vm360_vm6 = vcmp.eq.s32.totalorder %v358_v49, 0  ;;  %vm359_vm8 = vcmp.lt.s32.totalorder %v358_v49, 2 }
  0x4c   :  { %v503_v2 = vadd.s32 4294967294, %v126_v63  ;;  %v225_v6 = vsub.s32 %v221_v61, %v224_v3  ;;  %v248_v53 = vsel %vm163_vm1, %v247_v45, %v223_v0 }
  0x4d   :  { %v250_v1 = vsel %vm162_vm2, 0, %v248_v53 }
  0x4e   :  { %vm504_vm12 = vcmp.lt.s32.totalorder %v503_v2, 0  ;;  %v227_v10 = vsub.s32 0, %v225_v6  ;;  %v461_v62 = vadd.s32 3, %v250_v1 }
  0x4f   :  { %v129_v5 = vsel %vm504_vm12, 0, %v503_v2 }
  0x50   :  { %v130_v7 = vsub.s32 32, %v129_v5  ;;  %v131_v8 = vshll.u32 %v122_v58, %v129_v5  ;;  %v134_v9 = vsub.s32 4294967266, %v129_v5  ;;  %v506_v19 = vmin.u32 %v227_v10, %v225_v6 }
  0x52   :  { %v132_v16 = vshrl.u32 %v114_v4, %v130_v7  ;;  %v135_v18 = vadd.s32 127, %v134_v9  ;;  %v229_v22 = vclz %v506_v19  ;;  %v254_v7 = vand.u32 3, %v250_v1 }
  0x54   :  { %v133_v20 = vor.u32 %v132_v16, %v131_v8  ;;  %v136_v21 = vshll.u32 %v135_v18, 23  ;;  %v507_v26 = vadd.s32 4294967294, %v229_v22  ;;  %v462_v8 = vand.u32 3, %v461_v62 }
  0x55   :  { %vm259_vm11 = vcmp.eq.s32.totalorder %v254_v7, 2 }
  0x56   :  { %v137_v23 = vor.u32 4788187, %v136_v21  ;;  %v140_v25 = vcvt.s32.f32 %v133_v20  ;;  %vm508_vm13 = vcmp.lt.s32.totalorder %v507_v26, 0  ;;  %vm467_vm12 = vcmp.eq.s32.totalorder %v462_v8, 2 }
  0x57   :  { %v232_v31 = vsel %vm508_vm13, 0, %v507_v26  ;;  %vm256_vm13 = vcmp.eq.s32.totalorder %v254_v7, 0  ;;  %vm463_vm0 = vcmp.lt.s32.totalorder %v462_v8, 2 }
  0x58   :  { %v138_v27 = vand.u32 2147483647, %v137_v23  ;;  %v233_v32 = vsub.s32 32, %v232_v31  ;;  %v234_v33 = vshll.u32 %v225_v6, %v232_v31  ;;  %v237_v29 = vsub.s32 4294967266, %v232_v31 }
  0x5a   :  { %v141_v15 = vmul.f32 %v140_v25, %v138_v27  ;;  %v235_v36 = vshrl.u32 %v217_v13, %v233_v32  ;;  %v238_v37 = vadd.s32 127, %v237_v29 }
  0x5c   :  { %v142_v35 = vxor.u32 2147483648, %v141_v15  ;;  %v236_v41 = vor.u32 %v235_v36, %v234_v33  ;;  %v239_v42 = vshll.u32 %v238_v37, 23 }
  0x5e   :  { %v143_v38 = vsel %vm60_vm14, %v142_v35, %v141_v15  ;;  %v240_v44 = vor.u32 4788187, %v239_v42  ;;  %v243_v24 = vcvt.s32.f32 %v236_v41  ;;  %vm464_vm14 = vcmp.eq.s32.totalorder %v462_v8, 0 }
  0x5f   :  { %v146_v39 = vsel %vm59_vm15, %v642_v11, %v143_v38  ;;  %vm255_vm15 = vcmp.lt.s32.totalorder %v254_v7, 2 }
  0x60   :  { %536 = vcosq.f32 %v146_v39  ;;  %v241_v12 = vand.u32 2147483647, %v240_v44 }
  0x61   :  { %538 = vsinq.f32 %v146_v39 }
  0x62   :  { %v244_v47 = vmul.f32 %v243_v24, %v241_v12 }
  0x64   :  { %v245_v52 = vxor.u32 2147483648, %v244_v47 }
  0x66   :  { %v246_v56 = vsel %vm163_vm1, %v245_v52, %v244_v47  ;;  %vm253_vm1 = vweird.f32 %v646_v14 }
  0x67   :  { %v249_v58 = vsel %vm162_vm2, %v646_v14, %v246_v56 }
  0x68   :  { %540 = vcosq.f32 %v249_v58 }
  0x69   :  { %542 = vsinq.f32 %v249_v58 }
  0x6a   :  { %v537_v57 = vpop.eup %536 }
  0x6b   :  { %v539_v59 = vpop.eup %538  ;;  %v157_v60 = vxor.u32 2147483648, %v537_v57 }
  0x6c   :  { %v154_v61 = vxor.u32 2147483648, %v539_v59 }
  0x6d   :  { %v158_v17 = vsel %vm156_vm3, %v157_v60, %v539_v59  ;;  %v365_v55 = vsel %vm363_vm4, %v157_v60, %v539_v59 }
  0x6e   :  { %v155_v63 = vsel %vm153_vm5, %v537_v57, %v154_v61  ;;  %v362_v0 = vsel %vm360_vm6, %v537_v57, %v154_v61 }
  0x6f   :  { %v159_v2 = vsel %vm152_vm7, %v155_v63, %v158_v17  ;;  %v366_v3 = vsel %vm359_vm8, %v362_v0, %v365_v55 }
  0x70   :  { %v160_v4 = vsel %vm150_vm9, nan, %v159_v2  ;;  %v367_v5 = vsel %vm150_vm9, nan, %v366_v3 }
  0x71   :  { %v478_v6 = vsel %vm477_vm10, %v160_v4, %v367_v5 }
  0x72   :  { %480 = vst [vmem:[#allocation5] sm:$0xff] %v478_v6  ;;  %v541_v9 = vpop.eup %540 }
  0x73   :  { %v543_v10 = vpop.eup %542  ;;  %v260_v11 = vxor.u32 2147483648, %v541_v9 }
  0x74   :  { %v257_v16 = vxor.u32 2147483648, %v543_v10 }
  0x75   :  { %v261_v18 = vsel %vm259_vm11, %v260_v11, %v543_v10  ;;  %v469_v19 = vsel %vm467_vm12, %v260_v11, %v543_v10 }
  0x76   :  { %v258_v20 = vsel %vm256_vm13, %v541_v9, %v257_v16  ;;  %v466_v21 = vsel %vm464_vm14, %v541_v9, %v257_v16 }
  0x77   :  { %v262_v22 = vsel %vm255_vm15, %v258_v20, %v261_v18  ;;  %v470_v23 = vsel %vm463_vm0, %v466_v21, %v469_v19 }
  0x78   :  { %v263_v25 = vsel %vm253_vm1, nan, %v262_v22  ;;  %v471_v26 = vsel %vm253_vm1, nan, %v470_v23 }
  0x79   :  { %v479_v27 = vsel %vm477_vm10, %v263_v25, %v471_v26 }
  0x7a   :  { %481 = vst [vmem:[#allocation5 + $0x8] sm:$0xff] %v479_v27 }
  0x7b   :  { %577 = shalt.err (!%p574_p12)
}
  0x7c   :  { %s578_s4 = scalar_lea.hbm %s731_s3, 256 }
  0x7d   :  { %p579_p13 = scmp.ne.s32.totalorder %s731_s3, %s578_s4  ;;  %p582_p0 = scmp.lt.u32.totalorder %s578_s4, %s731_s3 }
  0x7f   :  { %p584_p1 = pnand %p582_p0, %p579_p13 }
  0x81   :  { %587 = shalt.err (!%p584_p1)
}
  0x82   :  { %s601_s9 = smov 128   ;;  %s602_s10 = smov 8  }
  0x83   :  { %493 = dma.vmem_to_hbm [thread:$0]  %s488_s27, 256, %s731_s3, [#allocation4], %s601_s9, %s601_s9, %s602_s10  }
  0x84   :  { %590 = dma.done.wait [#allocation4], 256  }
  0x85   :  { %591 = vsyncadd [#allocation4], 4294967040 }
  0x86   :  { %497 = vsyncpa [#allocation3], 1 }
  0x87   :  { %498 = vsyncpa [#allocation4], 1 }

</bundles_post_ra>
